<compile_context>
chip_gen: v7x
topology: tpu7x:2x2x1
jax: 0.10.0
libtpu: 0.0.40
codegen_flags: <defaults>
</compile_context>

<pallas_src>
import functools

import jax
import jax.numpy as jnp
from jax.experimental import pallas as pl
from jax.experimental.pallas import tpu as pltpu

# ---- module-level hyperparameters (the globals H, K, T, DR in model.py) ----
T = 8            # sequence / time-step length (BatchNorm1d channel count)
H = 32           # hidden width
K = 16           # attention / output width
EMB_INPUT = 24   # emb_input_size
DR = 0.2         # dropout prob (eval mode -> identity)
BN_EPS = 1e-5
MODEL_CONF = (2, 2)   # model_conf: n_fc layers per EmbeddedMapping level
B = 2            # batch size


def _round_up(n, m):
    return ((n + m - 1) // m) * m


# --------------------------------------------------------------------------
# Forward math on 2-D (B*T, F) activations.  `nxt()` yields the next parameter
# slab (a load from the packed VMEM buffer in-kernel, a plain array in the
# pure-JAX reference); `recip` is an approximate EUP reciprocal in-kernel and
# an exact divide in the reference.
#
# Parameter consumption order:
#   sel,
#   per level: norm0(s,sh), n_fc x [w, b, s, sh],
#   attention (fused over levels): Wv_blockdiag, bv_cat, sv_cat, shv_cat,
#                                  sf_cat, shf_cat,
#   final: wf, bf, sK, shK
# --------------------------------------------------------------------------
def _forward(model_conf, x, nxt, recip):
    nlev = len(model_conf)

    def sigmoid(u):
        # single EUP op instead of exp + reciprocal
        return 0.5 * jnp.tanh(0.5 * u) + 0.5

    sel = nxt()                               # (B, B*T) 0/1 batch selector

    # ---- EmbeddedMapping stack (sequential: level i+1 consumes level i) ----
    embs = []
    h = x                                     # (B*T, F)
    for n_fc in model_conf:
        s0, sh0 = nxt(), nxt()                # norm0, pre-broadcast (B*T, F)
        h = h * s0 + sh0
        for _ in range(n_fc):
            w = nxt()                         # (F, H)
            b, s, sh = nxt(), nxt(), nxt()    # (B*T, H)
            h = jnp.dot(h, w, preferred_element_type=jnp.float32) + b
            h = jnp.maximum(h * s + sh, 0.0)  # BN -> ReLU (dropout: eval identity)
        embs.append(h)

    # ---- AttentionModules: ONE block-diagonal fcv over all levels ----
    # (model.py uses fcv for BOTH the att and cla branches; fcf is unused)
    hcat = jnp.concatenate(embs, axis=1)                       # (B*T, nlev*H)
    wv = nxt()                                                 # (nlev*H, nlev*K)
    bv, sv, shv, sf, shf = nxt(), nxt(), nxt(), nxt(), nxt()   # (B*T, nlev*K)
    z = jnp.dot(hcat, wv, preferred_element_type=jnp.float32) + bv
    a_all = z * sv + shv                                       # normv
    c_all = z * sf + shf                                       # normf

    # per-level softmax over K (dim=2) + cla branch, lane-concatenated so ONE
    # selector matmul covers num & den for every level
    red_parts = []
    for l in range(nlev):
        a = a_all[:, l * K:(l + 1) * K]
        c = c_all[:, l * K:(l + 1) * K]
        m = jnp.max(a, axis=1, keepdims=True)
        e = jnp.exp(a - m)
        att = e * recip(jnp.sum(e, axis=1, keepdims=True))
        cla = sigmoid(c)
        red_parts += [cla * att, att]

    # norm_att = att / sum_T(att);  y = sum_T(cla * norm_att).  The softmax
    # denominator is t-independent, so the T-axis sums are exactly the
    # selector matmul.
    red = jnp.dot(sel, jnp.concatenate(red_parts, axis=1),
                  preferred_element_type=jnp.float32)          # (B, 2*nlev*K)
    ys = []
    for l in range(nlev):
        num = red[:, (2 * l) * K:(2 * l + 1) * K]
        den = red[:, (2 * l + 1) * K:(2 * l + 2) * K]
        ys.append(num * recip(den))                            # (B, K)

    # ---- final Linear(nlev*K, K) + BN1d(K) + sigmoid ----
    wf = nxt()                                 # (nlev*K, K)
    bf, sK, shK = nxt(), nxt(), nxt()          # (B, K)
    ycat = jnp.concatenate(ys, axis=1)         # (B, nlev*K), stays in registers
    out = jnp.dot(ycat, wf, preferred_element_type=jnp.float32) + bf
    return sigmoid(out * sK + shK)             # (B, K)


# --------------------------------------------------------------------------
# Pallas kernel: one VMEM input for activations, one packed VMEM input holding
# every parameter.  Parameters are loaded LAZILY at their point of use so live
# ranges stay short (no spills).  No scratch needed.
# --------------------------------------------------------------------------
def _mla_kernel(model_conf, layout, x_ref, p_ref, out_ref):
    counter = [0]

    def nxt():                                # load each slab where it is used
        ro, r, co, c = layout[counter[0]]
        counter[0] += 1
        return p_ref[ro:ro + r, co:co + c]

    out_ref[...] = _forward(
        model_conf, x_ref[...], nxt=nxt,
        recip=lambda v: pl.reciprocal(v, approx=True))   # EUP slot


def multi_level_attention(x, packed_params, layout, model_conf=MODEL_CONF):
    batch, t, feat = x.shape
    x2d = x.reshape(batch * t, feat)          # host-side reshape (free)
    fn = pl.pallas_call(
        functools.partial(_mla_kernel, model_conf, layout),
        out_shape=jax.ShapeDtypeStruct((batch, K), jnp.float32),
        in_specs=[pl.BlockSpec(memory_space=pltpu.MemorySpace.VMEM),
                  pl.BlockSpec(memory_space=pltpu.MemorySpace.VMEM)],
        out_specs=pl.BlockSpec(memory_space=pltpu.MemorySpace.VMEM),
    )
    # TODO(synk): if many (B, T) problems are ever run back-to-back, add a
    # leading "parallel" grid axis so v7x's second TensorCore is used and the
    # per-pallas_call overhead amortizes.
    return fn(x2d, packed_params)


# --------------------------------------------------------------------------
# Deterministic parameter construction (synthetic, no checkpoint).
# BN params are folded:  scale = gamma/sqrt(var+eps),  shift = beta - mean*scale
# BN scale/shift and biases are PRE-BROADCAST to (B*T, F) slabs; the per-level
# fcv weights are packed block-diagonally and their affines lane-concatenated.
# --------------------------------------------------------------------------
def init_slabs(key, model_conf=MODEL_CONF, batch=B):
    def bn_folded(k, n):
        k1, k2, k3, k4 = jax.random.split(k, 4)
        gamma = 1.0 + 0.1 * jax.random.normal(k1, (n,))
        beta = 0.1 * jax.random.normal(k2, (n,))
        mean = 0.1 * jax.random.normal(k3, (n,))
        var = jax.random.uniform(k4, (n,), minval=0.5, maxval=1.5)
        scale = gamma / jnp.sqrt(var + BN_EPS)
        shift = beta - mean * scale
        return scale, shift

    def linear(k, fan_in, fan_out):
        k1, k2 = jax.random.split(k)
        bound = 1.0 / jnp.sqrt(float(fan_in))
        w = jax.random.uniform(k1, (fan_in, fan_out), minval=-bound, maxval=bound)
        b = jax.random.uniform(k2, (fan_out,), minval=-bound, maxval=bound)
        return w, b

    nlev = len(model_conf)
    bt = batch * T

    def bn_rows(vec_t, feat):     # per-T vector -> (B*T, feat), row = b*T + t
        return jnp.tile(jnp.broadcast_to(vec_t[:, None], (T, feat)), (batch, 1))

    def row_bcast(vec, rows):     # per-feature vector -> (rows, feat)
        return jnp.broadcast_to(vec[None, :], (rows, vec.shape[0]))

    keys = iter(jax.random.split(key, 64))
    slabs, is_mxu = [], []

    def add(a, mxu=False):
        slabs.append(jnp.asarray(a, jnp.float32))
        is_mxu.append(mxu)

    # batch selector: sel[b, r] = 1 iff flattened row r belongs to batch b
    sel = (jnp.arange(bt)[None, :] // T == jnp.arange(batch)[:, None])
    add(sel.astype(jnp.float32), mxu=True)

    # EmbeddedMapping stack
    feat = EMB_INPUT
    for n_fc in model_conf:
        s, sh = bn_folded(next(keys), T)                     # norm0
        add(bn_rows(s, feat)); add(bn_rows(sh, feat))
        for _ in range(n_fc):
            w, b = linear(next(keys), feat, H)               # fc[j]
            add(w, mxu=True); add(row_bcast(b, bt))
            s, sh = bn_folded(next(keys), T)                 # norms[j]
            add(bn_rows(s, H)); add(bn_rows(sh, H))
            feat = H

    # AttentionModules: block-diagonal fcv + lane-concatenated BN affines
    wv_blk = jnp.zeros((nlev * H, nlev * K), jnp.float32)
    bv_p, sv_p, shv_p, sf_p, shf_p = [], [], [], [], []
    for l in range(nlev):
        w, b = linear(next(keys), H, K)                      # fcv (fcf unused)
        wv_blk = wv_blk.at[l * H:(l + 1) * H, l * K:(l + 1) * K].set(w)
        bv_p.append(row_bcast(b, bt))
        sv, shv = bn_folded(next(keys), T)                   # normv
        sf, shf = bn_folded(next(keys), T)                   # normf
        sv_p.append(bn_rows(sv, K)); shv_p.append(bn_rows(shv, K))
        sf_p.append(bn_rows(sf, K)); shf_p.append(bn_rows(shf, K))
    add(wv_blk, mxu=True)
    for parts in (bv_p, sv_p, shv_p, sf_p, shf_p):
        add(jnp.concatenate(parts, axis=1))

    # final fc + BN1d(K)
    w, b = linear(next(keys), nlev * K, K)
    sK, shK = bn_folded(next(keys), K)
    add(w, mxu=True); add(row_bcast(b, batch))
    add(row_bcast(sK, batch)); add(row_bcast(shK, batch))

    return slabs, is_mxu


def pack_slabs(slabs, is_mxu, slot_width=32, n_slots=4):
    """Pack all 2-D parameter slabs into one (rows, 128) f32 buffer.

    Four 32-lane column slots; every slab starts on an 8-row (sublane tile)
    boundary.  MXU operands (weights, selector) go to lane-slot 0 so their
    loads stay lane-aligned; everything else is greedily bin-packed by height.
    `layout` records (row_off, rows, col_off, cols) for static in-kernel slices.
    """
    slot_rows = [0] * n_slots
    place = [None] * len(slabs)
    for i, (s, mxu) in enumerate(zip(slabs, is_mxu)):
        assert s.shape[1] <= slot_width
        if mxu:
            place[i] = (slot_rows[0], 0)
            slot_rows[0] += _round_up(s.shape[0], 8)
    for i, (s, mxu) in enumerate(zip(slabs, is_mxu)):
        if not mxu:
            j = min(range(n_slots), key=lambda q: slot_rows[q])
            place[i] = (slot_rows[j], j * slot_width)
            slot_rows[j] += _round_up(s.shape[0], 8)

    total_rows = _round_up(max(slot_rows), 8)
    buf = jnp.zeros((total_rows, n_slots * slot_width), jnp.float32)
    layout = []
    for s, (ro, co) in zip(slabs, place):
        r, c = s.shape
        buf = buf.at[ro:ro + r, co:co + c].set(s)
        layout.append((ro, r, co, c))
    return buf, tuple(layout)


if __name__ == "__main__":
    root = jax.random.PRNGKey(0)
    k_x, k_p = jax.random.split(root)

    x = jax.random.normal(k_x, (B, T, EMB_INPUT), dtype=jnp.float32)
    slabs, is_mxu = init_slabs(k_p)
    packed, layout = pack_slabs(slabs, is_mxu)

    out = multi_level_attention(x, packed, layout)
    out = jax.block_until_ready(out)

    # pure-JAX reference (same math, exact divides) for a sanity check
    it = iter(slabs)
    ref = _forward(MODEL_CONF, x.reshape(B * T, EMB_INPUT),
                   nxt=lambda: next(it),
                   recip=lambda v: 1.0 / v)
    assert out.shape == (B, K)
    # in-kernel approx reciprocals -> ~1e-3-level agreement vs exact divide
    assert jnp.allclose(out, ref, atol=5e-3, rtol=5e-3), "mismatch vs reference"

    print("KERNEL_OK")
</pallas_src>

<mosaic_0001>
module attributes {stable_mosaic.version = 11 : i64} {
  func.func @_mla_kernel(%arg0: memref<16x24xf32, #tpu.memory_space<vmem>>, %arg1: memref<224x128xf32, #tpu.memory_space<vmem>>, %arg2: memref<2x16xf32, #tpu.memory_space<vmem>>) attributes {dimension_semantics = [], scalar_prefetch = 0 : i64, scratch_operands = 0 : i64, tpu.core_type = #tpu.core_type<tc>} {
    %c0 = arith.constant 0 : index
    %c0_0 = arith.constant 0 : index
    %0 = vector.load %arg0[%c0, %c0_0] : memref<16x24xf32, #tpu.memory_space<vmem>>, vector<16x24xf32>
    %c0_1 = arith.constant 0 : index
    %c0_2 = arith.constant 0 : index
    %1 = vector.load %arg1[%c0_1, %c0_2] : memref<224x128xf32, #tpu.memory_space<vmem>>, vector<2x16xf32>
    %c0_3 = arith.constant 0 : index
    %c32 = arith.constant 32 : index
    %2 = vector.load %arg1[%c0_3, %c32] : memref<224x128xf32, #tpu.memory_space<vmem>>, vector<16x24xf32>
    %c0_4 = arith.constant 0 : index
    %c64 = arith.constant 64 : index
    %3 = vector.load %arg1[%c0_4, %c64] : memref<224x128xf32, #tpu.memory_space<vmem>>, vector<16x24xf32>
    %4 = arith.mulf %0, %2 : vector<16x24xf32>
    %5 = arith.addf %4, %3 : vector<16x24xf32>
    %c8 = arith.constant 8 : index
    %c0_5 = arith.constant 0 : index
    %6 = vector.load %arg1[%c8, %c0_5] : memref<224x128xf32, #tpu.memory_space<vmem>>, vector<24x32xf32>
    %c0_6 = arith.constant 0 : index
    %c96 = arith.constant 96 : index
    %7 = vector.load %arg1[%c0_6, %c96] : memref<224x128xf32, #tpu.memory_space<vmem>>, vector<16x32xf32>
    %c16 = arith.constant 16 : index
    %c32_7 = arith.constant 32 : index
    %8 = vector.load %arg1[%c16, %c32_7] : memref<224x128xf32, #tpu.memory_space<vmem>>, vector<16x32xf32>
    %c16_8 = arith.constant 16 : index
    %c64_9 = arith.constant 64 : index
    %9 = vector.load %arg1[%c16_8, %c64_9] : memref<224x128xf32, #tpu.memory_space<vmem>>, vector<16x32xf32>
    %cst = arith.constant dense<0.000000e+00> : vector<16x32xf32>
    %10 = tpu.matmul %5, %6, %cst {dimension_numbers = #tpu.dot_dimension_numbers<[1], [0], [0], [1], [0, 0, 1, 1], [], []>} : vector<16x24xf32>, vector<24x32xf32>, vector<16x32xf32> -> vector<16x32xf32>
    %11 = arith.addf %10, %7 : vector<16x32xf32>
    %12 = arith.mulf %11, %8 : vector<16x32xf32>
    %13 = arith.addf %12, %9 : vector<16x32xf32>
    %cst_10 = arith.constant 0.000000e+00 : f32
    %14 = vector.broadcast %cst_10 : f32 to vector<16x32xf32>
    %15 = arith.maximumf %13, %14 : vector<16x32xf32>
    %c32_11 = arith.constant 32 : index
    %c0_12 = arith.constant 0 : index
    %16 = vector.load %arg1[%c32_11, %c0_12] : memref<224x128xf32, #tpu.memory_space<vmem>>, vector<32x32xf32>
    %c16_13 = arith.constant 16 : index
    %c96_14 = arith.constant 96 : index
    %17 = vector.load %arg1[%c16_13, %c96_14] : memref<224x128xf32, #tpu.memory_space<vmem>>, vector<16x32xf32>
    %c32_15 = arith.constant 32 : index
    %c32_16 = arith.constant 32 : index
    %18 = vector.load %arg1[%c32_15, %c32_16] : memref<224x128xf32, #tpu.memory_space<vmem>>, vector<16x32xf32>
    %c32_17 = arith.constant 32 : index
    %c64_18 = arith.constant 64 : index
    %19 = vector.load %arg1[%c32_17, %c64_18] : memref<224x128xf32, #tpu.memory_space<vmem>>, vector<16x32xf32>
    %cst_19 = arith.constant dense<0.000000e+00> : vector<16x32xf32>
    %20 = tpu.matmul %15, %16, %cst_19 {dimension_numbers = #tpu.dot_dimension_numbers<[1], [0], [0], [1], [0, 0, 1, 1], [], []>} : vector<16x32xf32>, vector<32x32xf32>, vector<16x32xf32> -> vector<16x32xf32>
    %21 = arith.addf %20, %17 : vector<16x32xf32>
    %22 = arith.mulf %21, %18 : vector<16x32xf32>
    %23 = arith.addf %22, %19 : vector<16x32xf32>
    %cst_20 = arith.constant 0.000000e+00 : f32
    %24 = vector.broadcast %cst_20 : f32 to vector<16x32xf32>
    %25 = arith.maximumf %23, %24 : vector<16x32xf32>
    %c32_21 = arith.constant 32 : index
    %c96_22 = arith.constant 96 : index
    %26 = vector.load %arg1[%c32_21, %c96_22] : memref<224x128xf32, #tpu.memory_space<vmem>>, vector<16x32xf32>
    %c48 = arith.constant 48 : index
    %c32_23 = arith.constant 32 : index
    %27 = vector.load %arg1[%c48, %c32_23] : memref<224x128xf32, #tpu.memory_space<vmem>>, vector<16x32xf32>
    %28 = arith.mulf %25, %26 : vector<16x32xf32>
    %29 = arith.addf %28, %27 : vector<16x32xf32>
    %c64_24 = arith.constant 64 : index
    %c0_25 = arith.constant 0 : index
    %30 = vector.load %arg1[%c64_24, %c0_25] : memref<224x128xf32, #tpu.memory_space<vmem>>, vector<32x32xf32>
    %c48_26 = arith.constant 48 : index
    %c64_27 = arith.constant 64 : index
    %31 = vector.load %arg1[%c48_26, %c64_27] : memref<224x128xf32, #tpu.memory_space<vmem>>, vector<16x32xf32>
    %c48_28 = arith.constant 48 : index
    %c96_29 = arith.constant 96 : index
    %32 = vector.load %arg1[%c48_28, %c96_29] : memref<224x128xf32, #tpu.memory_space<vmem>>, vector<16x32xf32>
    %c64_30 = arith.constant 64 : index
    %c32_31 = arith.constant 32 : index
    %33 = vector.load %arg1[%c64_30, %c32_31] : memref<224x128xf32, #tpu.memory_space<vmem>>, vector<16x32xf32>
    %cst_32 = arith.constant dense<0.000000e+00> : vector<16x32xf32>
    %34 = tpu.matmul %29, %30, %cst_32 {dimension_numbers = #tpu.dot_dimension_numbers<[1], [0], [0], [1], [0, 0, 1, 1], [], []>} : vector<16x32xf32>, vector<32x32xf32>, vector<16x32xf32> -> vector<16x32xf32>
    %35 = arith.addf %34, %31 : vector<16x32xf32>
    %36 = arith.mulf %35, %32 : vector<16x32xf32>
    %37 = arith.addf %36, %33 : vector<16x32xf32>
    %cst_33 = arith.constant 0.000000e+00 : f32
    %38 = vector.broadcast %cst_33 : f32 to vector<16x32xf32>
    %39 = arith.maximumf %37, %38 : vector<16x32xf32>
    %c96_34 = arith.constant 96 : index
    %c0_35 = arith.constant 0 : index
    %40 = vector.load %arg1[%c96_34, %c0_35] : memref<224x128xf32, #tpu.memory_space<vmem>>, vector<32x32xf32>
    %c64_36 = arith.constant 64 : index
    %c64_37 = arith.constant 64 : index
    %41 = vector.load %arg1[%c64_36, %c64_37] : memref<224x128xf32, #tpu.memory_space<vmem>>, vector<16x32xf32>
    %c64_38 = arith.constant 64 : index
    %c96_39 = arith.constant 96 : index
    %42 = vector.load %arg1[%c64_38, %c96_39] : memref<224x128xf32, #tpu.memory_space<vmem>>, vector<16x32xf32>
    %c80 = arith.constant 80 : index
    %c32_40 = arith.constant 32 : index
    %43 = vector.load %arg1[%c80, %c32_40] : memref<224x128xf32, #tpu.memory_space<vmem>>, vector<16x32xf32>
    %cst_41 = arith.constant dense<0.000000e+00> : vector<16x32xf32>
    %44 = tpu.matmul %39, %40, %cst_41 {dimension_numbers = #tpu.dot_dimension_numbers<[1], [0], [0], [1], [0, 0, 1, 1], [], []>} : vector<16x32xf32>, vector<32x32xf32>, vector<16x32xf32> -> vector<16x32xf32>
    %45 = arith.addf %44, %41 : vector<16x32xf32>
    %46 = arith.mulf %45, %42 : vector<16x32xf32>
    %47 = arith.addf %46, %43 : vector<16x32xf32>
    %cst_42 = arith.constant 0.000000e+00 : f32
    %48 = vector.broadcast %cst_42 : f32 to vector<16x32xf32>
    %49 = arith.maximumf %47, %48 : vector<16x32xf32>
    %50 = tpu.concatenate %25, %49 in 1 : vector<16x32xf32>, vector<16x32xf32> -> vector<16x64xf32>
    %c128 = arith.constant 128 : index
    %c0_43 = arith.constant 0 : index
    %51 = vector.load %arg1[%c128, %c0_43] : memref<224x128xf32, #tpu.memory_space<vmem>>, vector<64x32xf32>
    %c80_44 = arith.constant 80 : index
    %c64_45 = arith.constant 64 : index
    %52 = vector.load %arg1[%c80_44, %c64_45] : memref<224x128xf32, #tpu.memory_space<vmem>>, vector<16x32xf32>
    %c80_46 = arith.constant 80 : index
    %c96_47 = arith.constant 96 : index
    %53 = vector.load %arg1[%c80_46, %c96_47] : memref<224x128xf32, #tpu.memory_space<vmem>>, vector<16x32xf32>
    %c96_48 = arith.constant 96 : index
    %c32_49 = arith.constant 32 : index
    %54 = vector.load %arg1[%c96_48, %c32_49] : memref<224x128xf32, #tpu.memory_space<vmem>>, vector<16x32xf32>
    %c96_50 = arith.constant 96 : index
    %c64_51 = arith.constant 64 : index
    %55 = vector.load %arg1[%c96_50, %c64_51] : memref<224x128xf32, #tpu.memory_space<vmem>>, vector<16x32xf32>
    %c96_52 = arith.constant 96 : index
    %c96_53 = arith.constant 96 : index
    %56 = vector.load %arg1[%c96_52, %c96_53] : memref<224x128xf32, #tpu.memory_space<vmem>>, vector<16x32xf32>
    %cst_54 = arith.constant dense<0.000000e+00> : vector<16x32xf32>
    %57 = tpu.matmul %50, %51, %cst_54 {dimension_numbers = #tpu.dot_dimension_numbers<[1], [0], [0], [1], [0, 0, 1, 1], [], []>} : vector<16x64xf32>, vector<64x32xf32>, vector<16x32xf32> -> vector<16x32xf32>
    %58 = arith.addf %57, %52 : vector<16x32xf32>
    %59 = arith.mulf %58, %53 : vector<16x32xf32>
    %60 = arith.addf %59, %54 : vector<16x32xf32>
    %61 = arith.mulf %58, %55 : vector<16x32xf32>
    %62 = arith.addf %61, %56 : vector<16x32xf32>
    %63 = vector.extract_strided_slice %60 {offsets = [0, 0], sizes = [16, 16], strides = [1, 1]} : vector<16x32xf32> to vector<16x16xf32>
    %64 = vector.extract_strided_slice %62 {offsets = [0, 0], sizes = [16, 16], strides = [1, 1]} : vector<16x32xf32> to vector<16x16xf32>
    %cst_55 = arith.constant dense<0xFF800000> : vector<16xf32>
    %65 = vector.multi_reduction <maximumf>, %63, %cst_55 [1] : vector<16x16xf32> to vector<16xf32>
    %66 = vector.shape_cast %65 : vector<16xf32> to vector<16x1xf32>
    %67 = vector.broadcast %66 : vector<16x1xf32> to vector<16x16xf32>
    %68 = arith.subf %63, %67 : vector<16x16xf32>
    %69 = math.exp %68 : vector<16x16xf32>
    %cst_56 = arith.constant dense<0.000000e+00> : vector<16xf32>
    %70 = vector.multi_reduction <add>, %69, %cst_56 [1] : vector<16x16xf32> to vector<16xf32>
    %71 = vector.shape_cast %70 : vector<16xf32> to vector<16x1xf32>
    %72 = tpu.reciprocal %71 {approx = true} : vector<16x1xf32> -> vector<16x1xf32>
    %73 = vector.broadcast %72 : vector<16x1xf32> to vector<16x16xf32>
    %74 = arith.mulf %69, %73 : vector<16x16xf32>
    %cst_57 = arith.constant 5.000000e-01 : f32
    %75 = vector.broadcast %cst_57 : f32 to vector<16x16xf32>
    %76 = arith.mulf %75, %64 : vector<16x16xf32>
    %77 = math.tanh %76 : vector<16x16xf32>
    %cst_58 = arith.constant 5.000000e-01 : f32
    %78 = vector.broadcast %cst_58 : f32 to vector<16x16xf32>
    %79 = arith.mulf %78, %77 : vector<16x16xf32>
    %cst_59 = arith.constant 5.000000e-01 : f32
    %80 = vector.broadcast %cst_59 : f32 to vector<16x16xf32>
    %81 = arith.addf %79, %80 : vector<16x16xf32>
    %82 = arith.mulf %81, %74 : vector<16x16xf32>
    %83 = vector.extract_strided_slice %60 {offsets = [0, 16], sizes = [16, 16], strides = [1, 1]} : vector<16x32xf32> to vector<16x16xf32>
    %84 = vector.extract_strided_slice %62 {offsets = [0, 16], sizes = [16, 16], strides = [1, 1]} : vector<16x32xf32> to vector<16x16xf32>
    %cst_60 = arith.constant dense<0xFF800000> : vector<16xf32>
    %85 = vector.multi_reduction <maximumf>, %83, %cst_60 [1] : vector<16x16xf32> to vector<16xf32>
    %86 = vector.shape_cast %85 : vector<16xf32> to vector<16x1xf32>
    %87 = vector.broadcast %86 : vector<16x1xf32> to vector<16x16xf32>
    %88 = arith.subf %83, %87 : vector<16x16xf32>
    %89 = math.exp %88 : vector<16x16xf32>
    %cst_61 = arith.constant dense<0.000000e+00> : vector<16xf32>
    %90 = vector.multi_reduction <add>, %89, %cst_61 [1] : vector<16x16xf32> to vector<16xf32>
    %91 = vector.shape_cast %90 : vector<16xf32> to vector<16x1xf32>
    %92 = tpu.reciprocal %91 {approx = true} : vector<16x1xf32> -> vector<16x1xf32>
    %93 = vector.broadcast %92 : vector<16x1xf32> to vector<16x16xf32>
    %94 = arith.mulf %89, %93 : vector<16x16xf32>
    %cst_62 = arith.constant 5.000000e-01 : f32
    %95 = vector.broadcast %cst_62 : f32 to vector<16x16xf32>
    %96 = arith.mulf %95, %84 : vector<16x16xf32>
    %97 = math.tanh %96 : vector<16x16xf32>
    %cst_63 = arith.constant 5.000000e-01 : f32
    %98 = vector.broadcast %cst_63 : f32 to vector<16x16xf32>
    %99 = arith.mulf %98, %97 : vector<16x16xf32>
    %cst_64 = arith.constant 5.000000e-01 : f32
    %100 = vector.broadcast %cst_64 : f32 to vector<16x16xf32>
    %101 = arith.addf %99, %100 : vector<16x16xf32>
    %102 = arith.mulf %101, %94 : vector<16x16xf32>
    %103 = tpu.concatenate %82, %74, %102, %94 in 1 : vector<16x16xf32>, vector<16x16xf32>, vector<16x16xf32>, vector<16x16xf32> -> vector<16x64xf32>
    %cst_65 = arith.constant dense<0.000000e+00> : vector<2x64xf32>
    %104 = tpu.matmul %1, %103, %cst_65 {dimension_numbers = #tpu.dot_dimension_numbers<[1], [0], [0], [1], [0, 0, 1, 1], [], []>} : vector<2x16xf32>, vector<16x64xf32>, vector<2x64xf32> -> vector<2x64xf32>
    %105 = vector.extract_strided_slice %104 {offsets = [0, 0], sizes = [2, 16], strides = [1, 1]} : vector<2x64xf32> to vector<2x16xf32>
    %106 = vector.extract_strided_slice %104 {offsets = [0, 16], sizes = [2, 16], strides = [1, 1]} : vector<2x64xf32> to vector<2x16xf32>
    %107 = tpu.reciprocal %106 {approx = true} : vector<2x16xf32> -> vector<2x16xf32>
    %108 = arith.mulf %105, %107 : vector<2x16xf32>
    %109 = vector.extract_strided_slice %104 {offsets = [0, 32], sizes = [2, 16], strides = [1, 1]} : vector<2x64xf32> to vector<2x16xf32>
    %110 = vector.extract_strided_slice %104 {offsets = [0, 48], sizes = [2, 16], strides = [1, 1]} : vector<2x64xf32> to vector<2x16xf32>
    %111 = tpu.reciprocal %110 {approx = true} : vector<2x16xf32> -> vector<2x16xf32>
    %112 = arith.mulf %109, %111 : vector<2x16xf32>
    %c192 = arith.constant 192 : index
    %c0_66 = arith.constant 0 : index
    %113 = vector.load %arg1[%c192, %c0_66] : memref<224x128xf32, #tpu.memory_space<vmem>>, vector<32x16xf32>
    %c112 = arith.constant 112 : index
    %c32_67 = arith.constant 32 : index
    %114 = vector.load %arg1[%c112, %c32_67] : memref<224x128xf32, #tpu.memory_space<vmem>>, vector<2x16xf32>
    %c112_68 = arith.constant 112 : index
    %c64_69 = arith.constant 64 : index
    %115 = vector.load %arg1[%c112_68, %c64_69] : memref<224x128xf32, #tpu.memory_space<vmem>>, vector<2x16xf32>
    %c112_70 = arith.constant 112 : index
    %c96_71 = arith.constant 96 : index
    %116 = vector.load %arg1[%c112_70, %c96_71] : memref<224x128xf32, #tpu.memory_space<vmem>>, vector<2x16xf32>
    %117 = tpu.concatenate %108, %112 in 1 : vector<2x16xf32>, vector<2x16xf32> -> vector<2x32xf32>
    %cst_72 = arith.constant dense<0.000000e+00> : vector<2x16xf32>
    %118 = tpu.matmul %117, %113, %cst_72 {dimension_numbers = #tpu.dot_dimension_numbers<[1], [0], [0], [1], [0, 0, 1, 1], [], []>} : vector<2x32xf32>, vector<32x16xf32>, vector<2x16xf32> -> vector<2x16xf32>
    %119 = arith.addf %118, %114 : vector<2x16xf32>
    %120 = arith.mulf %119, %115 : vector<2x16xf32>
    %121 = arith.addf %120, %116 : vector<2x16xf32>
    %cst_73 = arith.constant 5.000000e-01 : f32
    %122 = vector.broadcast %cst_73 : f32 to vector<2x16xf32>
    %123 = arith.mulf %122, %121 : vector<2x16xf32>
    %124 = math.tanh %123 : vector<2x16xf32>
    %cst_74 = arith.constant 5.000000e-01 : f32
    %125 = vector.broadcast %cst_74 : f32 to vector<2x16xf32>
    %126 = arith.mulf %125, %124 : vector<2x16xf32>
    %cst_75 = arith.constant 5.000000e-01 : f32
    %127 = vector.broadcast %cst_75 : f32 to vector<2x16xf32>
    %128 = arith.addf %126, %127 : vector<2x16xf32>
    %c0_76 = arith.constant 0 : index
    %c0_77 = arith.constant 0 : index
    %129 = vector.load %arg2[%c0_76, %c0_77] : memref<2x16xf32, #tpu.memory_space<vmem>>, vector<2x16xf32>
    tpu.vector_store %arg2[%c0_76, %c0_77], %128 {strides = array<i32>} : memref<2x16xf32, #tpu.memory_space<vmem>>, vector<2x16xf32>,
    return
  }
}

</mosaic_0001>

<bundles_post_ra>
// kernel: tpu_custom_call.1
= control target key start
LH: loop header
LB: loop body
LE: loop exit
PB: predicated region body
PF: predicated region fallthrough
CT: control target
= control target key end

     0   :  { %7 = vsyncpa [#allocation3], 0  ;;  %s1456_s0 = inlined_call_operand.hbm [shape: f32[16,24], index: 0, kind: input, shape index: {}]   ;;  %s1457_s1 = inlined_call_operand.hbm [shape: f32[224,128], index: 1, kind: input, shape index: {}]   ;;  %s1458_s2 = inlined_call_operand.hbm [shape: f32[2,16], index: 2, kind: output, shape index: {}]  }
   0x1   :  { %8 = vsyncpa [#allocation6], 0 }
   0x2   :  { %9 = vsyncpa [#allocation4], 0  ;;  %s1269_s9 = smov [#allocation2]   ;;  %s1197_s13 = scalar_lea.hbm %s1456_s0, 256 }
   0x3   :  { %s15_s10 = sshll.u32 %s1269_s9, 4  ;;  %p1198_p0 = scmp.ne.s32.totalorder %s1456_s0, %s1197_s13  ;;  %s16_s10 = int_to_ptr.vmem [resolvable:$true] %s15_s10 }
   0x4   :  { %p1201_p1 = scmp.lt.u32.totalorder %s1197_s13, %s1456_s0 }
   0x6   :  { %p1203_p2 = pnand %p1201_p1, %p1198_p0 }
   0x8   :  { %1206 = shalt.err (!%p1203_p2)
}
   0x9   :  { %s1207_s18 = scalar_lea.vmem %s16_s10, 256  ;;  %p1212_p4 = scmp.lt.s32.totalorder %s16_s10, %s16_s10 }
   0xa   :  { %p1208_p3 = scmp.ne.s32.totalorder %s16_s10, %s1207_s18  ;;  %p1213_p5 = scmp.lt.s32.totalorder %s1207_s18, %s1207_s18 }
   0xc   :  { %p1214_p6 = por %p1213_p5, %p1212_p4 }
   0xe   :  { %p1215_p7 = pnand %p1214_p6, %p1208_p3 }
  0x10   :  { %1218 = shalt.err (!%p1215_p7)
}
  0x11   :  { %s1270_s19 = smov 128   ;;  %s1271_s20 = smov 8  }
  0x12   :  { %21 = dma.hbm_to_vmem [thread:$0]  %s1456_s0, 256, %s16_s10, [#allocation3], %s1270_s19, %s1270_s19, %s1271_s20  }
  0x13   :  { %s1272_s23 = smov [#allocation5]   ;;  %s1219_s27 = scalar_lea.hbm %s1457_s1, 3584 }
  0x14   :  { %s27_s24 = sshll.u32 %s1272_s23, 4  ;;  %p1220_p8 = scmp.ne.s32.totalorder %s1457_s1, %s1219_s27  ;;  %s28_s24 = int_to_ptr.vmem [resolvable:$true] %s27_s24 }
  0x15   :  { %p1223_p9 = scmp.lt.u32.totalorder %s1219_s27, %s1457_s1 }
  0x17   :  { %p1225_p10 = pnand %p1223_p9, %p1220_p8 }
  0x19   :  { %1228 = shalt.err (!%p1225_p10)
}
  0x1a   :  { %s1229_s4 = scalar_lea.vmem %s28_s24, 3584  ;;  %p1234_p12 = scmp.lt.s32.totalorder %s28_s24, %s28_s24 }
  0x1b   :  { %p1230_p11 = scmp.ne.s32.totalorder %s28_s24, %s1229_s4  ;;  %p1235_p13 = scmp.lt.s32.totalorder %s1229_s4, %s1229_s4 }
  0x1d   :  { %p1236_p0 = por %p1235_p13, %p1234_p12 }
  0x1f   :  { %p1237_p1 = pnand %p1236_p0, %p1230_p11 }
  0x21   :  { %1240 = shalt.err (!%p1237_p1)
}
  0x22   :  { %33 = dma.hbm_to_vmem [thread:$0]  %s1457_s1, 3584, %s28_s24, [#allocation6], %s1270_s19, %s1270_s19, %s1271_s20  }
  0x23   :  { %1263 = dma.done.wait [#allocation3], 256  }
  0x24   :  { %1264 = vsyncadd [#allocation3], 4294967040 }
  0x25   :  { %1265 = dma.done.wait [#allocation6], 3584  }
  0x26   :  { %1266 = vsyncadd [#allocation6], 4294963712  ;;  %v43_v0 = vld [vmem:[#allocation5] sm:$0xff]  ;;  %s1273_s6 = smov 96   ;;  %s1274_s7 = smov 64   ;;  %v44_v1 = vld [vmem:[#allocation5 + $0x8] sm:$0xff] }
  0x27   :  { %47 = vrot.lane.b32.xlu0 %v43_v0, %s1273_s6  ;;  %55 = vrot.lane.b32.xlu1 %v43_v0, %s1274_s7  ;;  %v63_v2 = vld [vmem:[#allocation5 + $0x10] sm:$0xff]  ;;  %v64_v4 = vld [vmem:[#allocation5 + $0x18] sm:$0xff]  ;;  %s1275_s1 = smov 32   ;;  %vm71_vm0 = vcmask 195584   ;;  %v173_v15 = vld [vmem:[#allocation5 + $0x20] sm:$0xff]  ;;  %vm183_vm1 = vcmask 261120  }
  0x28   :  { %v1092_v3 = vpack.c.bf16 %v63_v2, %v44_v1  ;;  %v40_v5 = vld [vmem:[#allocation2] sm:$0xff]  ;;  %v41_v9 = vld [vmem:[#allocation2 + $0x8] sm:$0xff]  ;;  %v174_v16 = vld [vmem:[#allocation5 + $0x28] sm:$0xff]  ;;  %vm551_vm2 = vcmask 523264   ;;  %vm700_vm3 = vcmask 261248   ;;  %vm667_vm4 = vcmask 130048  }
  0x29   :  { %v1096_v17 = vpack.c.bf16 %v174_v16, %v173_v15  ;;  %v175_v18 = vld [vmem:[#allocation5 + $0x30] sm:$0xff]  ;;  %v176_v19 = vld [vmem:[#allocation5 + $0x38] sm:$0xff]  ;;  %v303_v37 = vld [vmem:[#allocation5 + $0x40] sm:$0xff]  ;;  %s1276_s8 = smov 112   ;;  %s1277_s9 = smov 16   ;;  %vm1279_vm5 = vmmov 0  }
  0x2a   :  { %1093 = vmatprep.subr.bf16.mxu0 %v1092_v3  ;;  %v1100_v20 = vpack.c.bf16 %v176_v19, %v175_v18  ;;  %v304_v38 = vld [vmem:[#allocation5 + $0x48] sm:$0xff]  ;;  %v1349_v40 = vld [vmem:[#allocation5 + $0x50] sm:$0xff]  ;;  %v1351_v41 = vld [vmem:[#allocation5 + $0x58] sm:$0xff]  ;;  %vm761_vm6 = vcmask 392192   ;;  %s1281_s10 = smov [#allocation7]   ;;  %vm942_vm7 = vcmask 123904  }
  0x2b   :  { %49 = vrot.lane.b32.xlu0 %v44_v1, %s1273_s6  ;;  %57 = vrot.lane.b32.xlu1 %v44_v1, %s1274_s7  ;;  %v1104_v39 = vpack.c.bf16 %v304_v38, %v303_v37  ;;  %v1108_v42 = vpack.c.bf16 %v1351_v41, %v1349_v40  ;;  %s950_s11 = sshll.u32 %s1281_s10, 4  ;;  %s951_s11 = int_to_ptr.vmem [resolvable:$true] %s950_s11 }
  0x2c   :  { %1095 = vmatpush3.bf16.msra.mxu0 %v1092_v3  ;;  %1097 = vmatprep.subr.bf16.mxu1 %v1096_v17  ;;  %v1375_v3 = vld [vmem:[#allocation5 + $0x60] sm:$0xff]  ;;  %s1241_s12 = scalar_lea.vmem %s951_s11, 32  ;;  %p1246_p3 = scmp.lt.s32.totalorder %s951_s11, %s951_s11 }
  0x2d   :  { %1017 = vmatprep.subr.mxu0 %v64_v4  ;;  %1099 = vmatpush3.bf16.msra.mxu1 %v1096_v17  ;;  %p1242_p2 = scmp.ne.s32.totalorder %s951_s11, %s1241_s12  ;;  %p1247_p4 = scmp.lt.s32.totalorder %s1241_s12, %s1241_s12 }
  0x2e   :  { %1101 = vmatprep.subr.bf16.mxu1 %v1100_v20 }
  0x2f   :  { %67 = vrot.lane.b32.xlu1 %v44_v1, %s1275_s1  ;;  %65 = vrot.lane.b32.xlu0 %v43_v0, %s1275_s1  ;;  %p1248_p5 = por %p1247_p4, %p1246_p3 }
  0x30   :  { %1018 = vmatpush3.msra.mxu0 %v64_v4 }
  0x31   :  { %1103 = vmatpush3.bf16.msra.mxu1 %v1100_v20  ;;  %1105 = vmatprep.subr.bf16.mxu0 %v1104_v39  ;;  %p1249_p6 = pnand %p1248_p5, %p1242_p2 }
  0x33   :  { %157 = vrot.lane.b32.xlu1 %v64_v4, %s1273_s6  ;;  %155 = vrot.lane.b32.xlu0 %v63_v2, %s1273_s6 }
  0x37   :  { %165 = vrot.lane.b32.xlu1 %v64_v4, %s1274_s7  ;;  %163 = vrot.lane.b32.xlu0 %v63_v2, %s1274_s7 }
  0x3b   :  { %179 = vrot.lane.b32.xlu1 %v64_v4, %s1275_s1  ;;  %177 = vrot.lane.b32.xlu0 %v63_v2, %s1275_s1  ;;  %v1377_v4 = vld [vmem:[#allocation5 + $0x68] sm:$0xff] }
  0x3f   :  { %269 = vrot.lane.b32.xlu1 %v174_v16, %s1273_s6  ;;  %267 = vrot.lane.b32.xlu0 %v173_v15, %s1273_s6 }
  0x43   :  { %277 = vrot.lane.b32.xlu1 %v174_v16, %s1274_s7  ;;  %275 = vrot.lane.b32.xlu0 %v173_v15, %s1274_s7 }
  0x47   :  { %287 = vrot.lane.b32.xlu1 %v174_v16, %s1275_s1  ;;  %285 = vrot.lane.b32.xlu0 %v173_v15, %s1275_s1 }
  0x4b   :  { %297 = vrot.lane.b32.xlu1 %v176_v19, %s1273_s6  ;;  %295 = vrot.lane.b32.xlu0 %v175_v18, %s1273_s6 }
  0x4f   :  { %309 = vrot.lane.b32.xlu1 %v176_v19, %s1274_s7  ;;  %307 = vrot.lane.b32.xlu0 %v175_v18, %s1274_s7 }
  0x53   :  { %396 = vrot.lane.b32.xlu1 %v176_v19, %s1275_s1  ;;  %394 = vrot.lane.b32.xlu0 %v175_v18, %s1275_s1 }
  0x57   :  { %406 = vrot.lane.b32.xlu1 %v304_v38, %s1273_s6  ;;  %404 = vrot.lane.b32.xlu0 %v303_v37, %s1273_s6 }
  0x5b   :  { %420 = vrot.lane.b32.xlu1 %v304_v38, %s1274_s7  ;;  %418 = vrot.lane.b32.xlu0 %v303_v37, %s1274_s7 }
  0x5f   :  { %507 = vrot.lane.b32.xlu1 %v304_v38, %s1275_s1  ;;  %505 = vrot.lane.b32.xlu0 %v303_v37, %s1275_s1 }
  0x63   :  { %517 = vrot.lane.b32.xlu1 %v1351_v41, %s1273_s6  ;;  %515 = vrot.lane.b32.xlu0 %v1349_v40, %s1273_s6 }
  0x99   :  { %v48_v6 = vpop.permute.xlu0 %47  ;;  %v56_v7 = vpop.permute.xlu1 %55 }
  0x9a   :  { %v53_v8 = vmul.f32 %v48_v6, %v40_v5  ;;  %v1112_v5 = vpack.c.bf16 %v1377_v4, %v1375_v3  ;;  %v416_v6 = vld [vmem:[#allocation5 + $0x70] sm:$0xff] }
  0x9c   :  { %v61_v10 = vadd.f32 %v56_v7, %v53_v8  ;;  %1113 = vmatprep.subr.bf16.mxu1 %v1112_v5  ;;  %v417_v7 = vld [vmem:[#allocation5 + $0x78] sm:$0xff] }
  0x9d   :  { %v50_v11 = vpop.permute.xlu0 %49  ;;  %v58_v12 = vpop.permute.xlu1 %57  ;;  %v1116_v8 = vpack.c.bf16 %v417_v7, %v416_v6 }
  0x9e   :  { %v54_v13 = vmul.f32 %v50_v11, %v41_v9  ;;  %1019 = vmatprep.mubr.msk.f32.mxu0 %vm71_vm0, %v61_v10 }
  0xa0   :  { %v62_v14 = vadd.f32 %v58_v12, %v54_v13 }
  0xa1   :  { %v68_v21 = vpop.permute.xlu1 %67  ;;  %v66_v22 = vpop.permute.xlu0 %65 }
  0xa2   :  { %1020 = vmatmul.mubr.msk.f32.vlgmr.msra.gmra.mrb[0].mxu0 %vm71_vm0, %v62_v14 }
  0xa3   :  { %1107 = vmatpush3.bf16.msra.mxu0 %v1104_v39 }
  0xa4   :  { %1109 = vmatprep.subr.bf16.mxu0 %v1108_v42 }
  0xa5   :  { %v158_v23 = vpop.permute.xlu1 %157  ;;  %v156_v24 = vpop.permute.xlu0 %155 }
  0xa7   :  { %1111 = vmatpush3.bf16.msra.mxu0 %v1108_v42 }
  0xa9   :  { %v166_v29 = vpop.permute.xlu1 %165  ;;  %v164_v31 = vpop.permute.xlu0 %163 }
  0xad   :  { %v178_v43 = vpop.permute.xlu0 %177  ;;  %v180_v44 = vpop.permute.xlu1 %179 }
  0xb1   :  { %v268_v45 = vpop.permute.xlu0 %267  ;;  %v270_v46 = vpop.permute.xlu1 %269 }
  0xb5   :  { %v276_v47 = vpop.permute.xlu0 %275  ;;  %v278_v48 = vpop.permute.xlu1 %277 }
  0xb9   :  { %v286_v54 = vpop.permute.xlu0 %285  ;;  %v288_v56 = vpop.permute.xlu1 %287 }
  0xbd   :  { %v296_v62 = vpop.permute.xlu0 %295  ;;  %v298_v0 = vpop.permute.xlu1 %297 }
  0xc1   :  { %v310_v9 = vpop.permute.xlu1 %309  ;;  %v308_v10 = vpop.permute.xlu0 %307 }
  0xc5   :  { %v397_v11 = vpop.permute.xlu1 %396  ;;  %v395_v12 = vpop.permute.xlu0 %394 }
  0xc9   :  { %v407_v17 = vpop.permute.xlu1 %406  ;;  %v405_v19 = vpop.permute.xlu0 %404 }
  0xcd   :  { %v421_v37 = vpop.permute.xlu1 %420  ;;  %v419_v38 = vpop.permute.xlu0 %418 }
  0xd1   :  { %v508_v39 = vpop.permute.xlu1 %507  ;;  %v506_v42 = vpop.permute.xlu0 %505 }
 0x175   :  { %v1021_v25 = vpop.f32.mrb[0].mxu0 }
 0x176   :  { %v150_v26 = vadd.f32 %v1021_v25, %v68_v21  ;;  %v144_v27 = vpop.f32.mrb[1].mxu0  ;;  %v535_v25 = vld [vmem:[#allocation5 + $0x80] sm:$0xff] }
 0x177   :  { %v145_v28 = vadd.f32 %v144_v27, %v66_v22  ;;  %v537_v27 = vld [vmem:[#allocation5 + $0x90] sm:$0xff] }
 0x178   :  { %v162_v30 = vmul.f32 %v158_v23, %v150_v26  ;;  %v536_v26 = vld [vmem:[#allocation5 + $0x88] sm:$0xff] }
 0x179   :  { %v161_v32 = vmul.f32 %v156_v24, %v145_v28  ;;  %v1120_v28 = vpack.c.bf16 %v536_v26, %v535_v25 }
 0x17a   :  { %v170_v33 = vadd.f32 %v166_v29, %v162_v30  ;;  %v538_v29 = vld [vmem:[#allocation5 + $0x98] sm:$0xff] }
 0x17b   :  { %v169_v34 = vadd.f32 %v164_v31, %v161_v32  ;;  %v1124_v30 = vpack.c.bf16 %v538_v29, %v537_v27  ;;  %v539_v31 = vld [vmem:[#allocation5 + $0xa0] sm:$0xff]  ;;  %v540_v32 = vld [vmem:[#allocation5 + $0xa8] sm:$0xff]  ;;  %1121 = vmatprep.subr.bf16.mxu0 %v1120_v28 }
 0x17c   :  { %v172_v36 = vmax.f32 %v170_v33, 0.0  ;;  %v1128_v33 = vpack.c.bf16 %v540_v32, %v539_v31 }
 0x17d   :  { %v171_v35 = vmax.f32 %v169_v34, 0.0  ;;  %v541_v34 = vld [vmem:[#allocation5 + $0xb0] sm:$0xff] }
 0x17f   :  { %1030 = vmatprep.mubr.msk.f32.mxu1 %vm183_vm1, %v171_v35  ;;  %v542_v35 = vld [vmem:[#allocation5 + $0xb8] sm:$0xff] }
 0x180   :  { %1031 = vmatmul.mubr.msk.f32.vlgmr.msra.gmra.mrb[0].mxu1 %vm183_vm1, %v172_v36  ;;  %v1132_v36 = vpack.c.bf16 %v542_v35, %v541_v34 }
 0x181   :  { %1115 = vmatpush3.bf16.msra.mxu1 %v1112_v5 }
 0x182   :  { %1117 = vmatprep.subr.bf16.mxu1 %v1116_v8 }
 0x185   :  { %1119 = vmatpush3.bf16.msra.mxu1 %v1116_v8 }
 0x253   :  { %v1032_v49 = vpop.f32.mrb[0].mxu1 }
 0x254   :  { %v262_v50 = vadd.f32 %v1032_v49, %v180_v44  ;;  %v256_v51 = vpop.f32.mrb[1].mxu1  ;;  %v516_v49 = vpop.permute.xlu0 %515 }
 0x255   :  { %v257_v52 = vadd.f32 %v256_v51, %v178_v43 }
 0x256   :  { %v274_v53 = vmul.f32 %v270_v46, %v262_v50 }
 0x257   :  { %v273_v55 = vmul.f32 %v268_v45, %v257_v52 }
 0x258   :  { %v1363_v57 = vadd.f32 %v278_v48, %v274_v53 }
 0x259   :  { %v1365_v58 = vadd.f32 %v276_v47, %v273_v55  ;;  %v518_v47 = vpop.permute.xlu1 %517 }
 0x25a   :  { %v284_v59 = vmax.f32 %v1363_v57, 0.0 }
 0x25b   :  { %v283_v60 = vmax.f32 %v1365_v58, 0.0 }
 0x25c   :  { %v292_v61 = vmul.f32 %v288_v56, %v284_v59 }
 0x25d   :  { %v291_v63 = vmul.f32 %v286_v54, %v283_v60 }
 0x25e   :  { %v302_v2 = vadd.f32 %v298_v0, %v292_v61 }
 0x25f   :  { %v301_v1 = vadd.f32 %v296_v62, %v291_v63 }
 0x261   :  { %1041 = vmatprep.mubr.msk.f32.mxu0 %vm183_vm1, %v301_v1 }
 0x262   :  { %1042 = vmatmul.mubr.msk.f32.vlgmr.msra.gmra.mrb[2].mxu0 %vm183_vm1, %v302_v2 }
 0x263   :  { %1123 = vmatpush3.bf16.msra.mxu0 %v1120_v28 }
 0x264   :  { %1125 = vmatprep.subr.bf16.mxu0 %v1124_v30 }
 0x267   :  { %1127 = vmatpush3.bf16.msra.mxu0 %v1124_v30 }
 0x268   :  { %1129 = vmatprep.subr.bf16.mxu0 %v1128_v33 }
 0x26b   :  { %1131 = vmatpush3.bf16.msra.mxu0 %v1128_v33 }
 0x26c   :  { %1133 = vmatprep.subr.bf16.mxu0 %v1132_v36 }
 0x26f   :  { %1135 = vmatpush3.bf16.msra.mxu0 %v1132_v36 }
 0x335   :  { %v1043_v13 = vpop.f32.mrb[2].mxu0 }
 0x336   :  { %v391_v14 = vadd.f32 %v1043_v13, %v310_v9  ;;  %v385_v15 = vpop.f32.mrb[3].mxu0 }
 0x337   :  { %v386_v16 = vadd.f32 %v385_v15, %v308_v10 }
 0x338   :  { %v401_v18 = vmul.f32 %v397_v11, %v391_v14 }
 0x339   :  { %v400_v20 = vmul.f32 %v395_v12, %v386_v16 }
 0x33a   :  { %v411_v21 = vadd.f32 %v407_v17, %v401_v18 }
 0x33b   :  { %v410_v22 = vadd.f32 %v405_v19, %v400_v20 }
 0x33c   :  { %v413_v24 = vmax.f32 %v411_v21, 0.0 }
 0x33d   :  { %v412_v23 = vmax.f32 %v410_v22, 0.0 }
 0x33f   :  { %1052 = vmatprep.mubr.msk.f32.mxu1 %vm183_vm1, %v412_v23 }
 0x340   :  { %1053 = vmatmul.mubr.msk.f32.vlgmr.msra.gmra.mrb[2].mxu1 %vm183_vm1, %v413_v24 }
 0x413   :  { %v1054_v43 = vpop.f32.mrb[2].mxu1 }
 0x414   :  { %v502_v44 = vadd.f32 %v1054_v43, %v421_v37  ;;  %v496_v45 = vpop.f32.mrb[3].mxu1 }
 0x415   :  { %v497_v46 = vadd.f32 %v496_v45, %v419_v38 }
 0x416   :  { %v512_v48 = vmul.f32 %v508_v39, %v502_v44 }
 0x417   :  { %v511_v50 = vmul.f32 %v506_v42, %v497_v46 }
 0x418   :  { %v522_v51 = vadd.f32 %v518_v47, %v512_v48 }
 0x419   :  { %v521_v52 = vadd.f32 %v516_v49, %v511_v50 }
 0x41a   :  { %v524_v53 = vmax.f32 %v522_v51, 0.0 }
 0x41b   :  { %v523_v54 = vmax.f32 %v521_v52, 0.0 }
 0x41c   :  { %529 = vrot.lane.b32.xlu1 %v524_v53, %s1275_s1 }
 0x41d   :  { %527 = vrot.lane.b32.xlu0 %v523_v54, %s1275_s1 }
 0x420   :  { %547 = vrot.lane.b32.xlu1 %v1351_v41, %s1274_s7 }
 0x421   :  { %545 = vrot.lane.b32.xlu0 %v1349_v40, %s1274_s7 }
 0x424   :  { %635 = vrot.lane.b32.xlu1 %v1351_v41, %s1275_s1 }
 0x425   :  { %633 = vrot.lane.b32.xlu0 %v1349_v40, %s1275_s1 }
 0x428   :  { %645 = vrot.lane.b32.xlu1 %v1377_v4, %s1273_s6 }
 0x429   :  { %643 = vrot.lane.b32.xlu0 %v1375_v3, %s1273_s6 }
 0x48e   :  { %v530_v55 = vpop.permute.xlu1 %529 }
 0x48f   :  { %v528_v56 = vpop.permute.xlu0 %527  ;;  %v534_v41 = vsel %vm183_vm1, %v284_v59, %v530_v55 }
 0x490   :  { %v533_v61 = vsel %vm183_vm1, %v283_v60, %v528_v56 }
 0x491   :  { %1071 = vmatprep.mubr.msk.f32.mxu0 %vm551_vm2, %v533_v61 }
 0x492   :  { %1072 = vmatmul.mubr.msk.f32.vlgmr.msra.gmra.mrb[4].mxu0 %vm551_vm2, %v534_v41  ;;  %v548_v40 = vpop.permute.xlu1 %547 }
 0x493   :  { %v546_v62 = vpop.permute.xlu0 %545 }
 0x496   :  { %v636_v63 = vpop.permute.xlu1 %635 }
 0x497   :  { %v634_v0 = vpop.permute.xlu0 %633 }
 0x49a   :  { %v646_v7 = vpop.permute.xlu1 %645 }
 0x49b   :  { %v644_v60 = vpop.permute.xlu0 %643 }
 0x565   :  { %v1073_v1 = vpop.f32.mrb[4].mxu0 }
 0x566   :  { %v1403_v2 = vadd.f32 %v1073_v1, %v548_v40  ;;  %v624_v5 = vpop.f32.mrb[5].mxu0 }
 0x567   :  { %v1405_v6 = vadd.f32 %v624_v5, %v546_v62 }
 0x568   :  { %v640_v58 = vmul.f32 %v636_v63, %v1403_v2  ;;  %v1278_v63 = vmov 0.0|0.0  }
 0x569   :  { %v639_v57 = vmul.f32 %v634_v0, %v1405_v6  ;;  %1136 = vmatprep.subr.bf16.mxu1 %v1278_v63 }
 0x56a   :  { %v650_v59 = vadd.f32 %v646_v7, %v640_v58 }
 0x56b   :  { %v649_v8 = vadd.f32 %v644_v60, %v639_v57 }
 0x56c   :  { %v704_v9 = vsel %vm700_vm3, %v650_v59, -inf  ;;  %v671_v11 = vsel %vm667_vm4, %v650_v59, -inf }
 0x56d   :  { %705 = vmax.xlane.f32.xlu1 %v704_v9  ;;  %v701_v10 = vsel %vm700_vm3, %v649_v8, -inf  ;;  %v668_v12 = vsel %vm667_vm4, %v649_v8, -inf }
 0x56e   :  { %702 = vmax.xlane.f32.xlu0 %v701_v10 }
 0x572   :  { %672 = vmax.xlane.f32.xlu0 %v671_v11 }
 0x576   :  { %669 = vmax.xlane.f32.xlu0 %v668_v12 }
 0x57e   :  { %651 = vrot.lane.b32.xlu1 %v1375_v3, %s1274_s7 }
 0x5fa   :  { %v706_v13 = vpop.xlane.xlu1 %705 }
 0x5fb   :  { %v708_v14 = vsub.f32 %v650_v59, %v706_v13  ;;  %v703_v15 = vpop.xlane.xlu0 %702 }
 0x5fc   :  { %v707_v16 = vsub.f32 %v649_v8, %v703_v15 }
 0x5fd   :  { %v711_v17 = vmul.f32 1.442695, %v708_v14 }
 0x5fe   :  { %v709_v18 = vmul.f32 1.442695, %v707_v16  ;;  %v652_v31 = vpop.permute.xlu1 %651 }
 0x5ff   :  { %1173 = vpow2.f32 %v711_v17  ;;  %v673_v21 = vpop.xlane.xlu0 %672  ;;  %v657_v45 = vmul.f32 %v652_v31, %v1405_v6  ;;  %v1280_v6 = vmov 0.0   ;;  %v846_v31 = vld [vmem:[#allocation5 + $0xd8] sm:$0xff] }
 0x600   :  { %1175 = vpow2.f32 %v709_v18  ;;  %v675_v22 = vsub.f32 %v650_v59, %v673_v21  ;;  %1078 = vmatprep.mubr.msk.f32.mxu1 %vm1279_vm5, %v1280_v6 }
 0x602   :  { %v678_v24 = vmul.f32 1.442695, %v675_v22 }
 0x603   :  { %v670_v23 = vpop.xlane.xlu0 %669 }
 0x604   :  { %v674_v25 = vsub.f32 %v649_v8, %v670_v23  ;;  %1177 = vpow2.f32 %v678_v24  ;;  %v42_v24 = vld [vmem:[#allocation5] sm:$0x3] }
 0x606   :  { %v676_v26 = vmul.f32 1.442695, %v674_v25 }
 0x608   :  { %1179 = vpow2.f32 %v676_v26 }
 0x609   :  { %v1174_v19 = vpop.eup %1173 }
 0x60a   :  { %v1176_v20 = vpop.eup %1175  ;;  %717 = vrot.lane.b32.xlu0 %v1174_v19, %s1276_s8 }
 0x60b   :  { %715 = vrot.lane.b32.xlu1 %v1176_v20, %s1276_s8 }
 0x60e   :  { %v1178_v27 = vpop.eup %1177 }
 0x60f   :  { %v683_v28 = vsel %vm667_vm4, %v1178_v27, 0.0 }
 0x612   :  { %v1180_v29 = vpop.eup %1179 }
 0x613   :  { %v680_v30 = vsel %vm667_vm4, %v1180_v29, 0.0 }
 0x629   :  { %684 = vadd.xlane.f32.xlu0 %v683_v28  ;;  %v844_v28 = vld [vmem:[#allocation5 + $0xc8] sm:$0xff] }
 0x62f   :  { %681 = vadd.xlane.f32.xlu1 %v680_v30 }
 0x640   :  { %659 = vrot.lane.b32.xlu1 %v1375_v3, %s1275_s1 }
 0x67c   :  { %v718_v32 = vpop.permute.xlu0 %717 }
 0x67d   :  { %v716_v33 = vpop.permute.xlu1 %715  ;;  %v724_v34 = vsel %vm667_vm4, %v718_v32, 0.0 }
 0x67e   :  { %725 = vadd.xlane.f32.xlu0 %v724_v34  ;;  %v721_v35 = vsel %vm667_vm4, %v716_v33, 0.0  ;;  %v847_v34 = vld [vmem:[#allocation5 + $0x70] sm:$0x3] }
 0x67f   :  { %722 = vadd.xlane.f32.xlu1 %v721_v35 }
 0x690   :  { %661 = vrot.lane.b32.xlu1 %v1377_v4, %s1275_s1 }
 0x694   :  { %653 = vrot.lane.b32.xlu0 %v1377_v4, %s1274_s7 }
 0x6b6   :  { %v685_v36 = vpop.xlane.xlu0 %684 }
 0x6b7   :  { %1181 = vrcp.f32 %v685_v36 }
 0x6bc   :  { %v682_v37 = vpop.xlane.xlu1 %681 }
 0x6bd   :  { %1183 = vrcp.f32 %v682_v37 }
 0x6c0   :  { %v660_v44 = vpop.permute.xlu1 %659 }
 0x6c1   :  { %v1182_v3 = vpop.eup %1181  ;;  %v665_v46 = vadd.f32 %v660_v44, %v657_v45 }
 0x6c2   :  { %v689_v42 = vmul.f32 %v1182_v3, %v1178_v27  ;;  %v843_v27 = vld [vmem:[#allocation5 + $0xc0] sm:$0xff] }
 0x6c3   :  { %v690_v4 = vmul.f32 0.5, %v665_v46  ;;  %v1140_v30 = vpack.c.bf16 %v844_v28, %v843_v27 }
 0x6c7   :  { %v1184_v38 = vpop.eup %1183 }
 0x6c8   :  { %v688_v39 = vmul.f32 %v1184_v38, %v1180_v29  ;;  %v845_v29 = vld [vmem:[#allocation5 + $0xd0] sm:$0xff] }
 0x6c9   :  { %v1143_v32 = vpack.c.bf16 %v846_v31, %v845_v29 }
 0x6ca   :  { %v1158_v43 = vpack.i.bf16 %v689_v42, %v688_v39 }
 0x6cc   :  { %1159 = vrot.lane.b32.xlu0 %v1158_v43, %s1277_s9 }
 0x70b   :  { %v726_v47 = vpop.xlane.xlu0 %725 }
 0x70c   :  { %1185 = vrcp.f32 %v726_v47  ;;  %v723_v48 = vpop.xlane.xlu1 %722 }
 0x70d   :  { %1187 = vrcp.f32 %v723_v48 }
 0x70e   :  { %1189 = vtanh.f32 %v690_v4 }
 0x70f   :  { %v654_v49 = vpop.permute.xlu0 %653 }
 0x710   :  { %v658_v50 = vmul.f32 %v654_v49, %v1403_v2  ;;  %v662_v51 = vpop.permute.xlu1 %661 }
 0x712   :  { %v666_v52 = vadd.f32 %v662_v51, %v658_v50 }
 0x714   :  { %v691_v53 = vmul.f32 0.5, %v666_v52 }
 0x716   :  { %v1186_v54 = vpop.eup %1185  ;;  %1191 = vtanh.f32 %v691_v53 }
 0x717   :  { %v1188_v55 = vpop.eup %1187  ;;  %v730_v56 = vmul.f32 %v1186_v54, %v1174_v19 }
 0x718   :  { %v729_v61 = vmul.f32 %v1188_v55, %v1176_v20  ;;  %v1190_v40 = vpop.eup %1189 }
 0x719   :  { %v694_v62 = vmul.f32 0.5, %v1190_v40 }
 0x71a   :  { %v1168_v41 = vpack.i.bf16 %v730_v56, %v729_v61 }
 0x71b   :  { %v696_v5 = vadd.f32 0.5, %v694_v62 }
 0x71c   :  { %1169 = vrot.lane.b32.xlu0 %v1168_v41, %s1275_s1 }
 0x71d   :  { %v731_v7 = vmul.f32 %v729_v61, %v696_v5  ;;  %v698_v10 = vmul.f32 %v696_v5, %v688_v39 }
 0x720   :  { %v1192_v0 = vpop.eup %1191 }
 0x721   :  { %v695_v1 = vmul.f32 0.5, %v1192_v0 }
 0x723   :  { %v697_v2 = vadd.f32 0.5, %v695_v1 }
 0x725   :  { %v732_v58 = vmul.f32 %v730_v56, %v697_v2  ;;  %v699_v11 = vmul.f32 %v697_v2, %v689_v42 }
 0x727   :  { %v1163_v60 = vpack.i.bf16 %v732_v58, %v731_v7 }
 0x729   :  { %1164 = vrot.lane.b32.xlu1 %v1163_v60, %s1277_s9 }
 0x73e   :  { %v1160_v57 = vpop.permute.xlu0 %1159 }
 0x73f   :  { %v1162_v59 = vunpack.i.h.bf16 %v1160_v57  ;;  %v1161_v8 = vunpack.i.l.bf16 %v1160_v57 }
 0x741   :  { %v758_v15 = vsel %vm667_vm4, %v699_v11, %v1162_v59  ;;  %v757_v16 = vsel %vm667_vm4, %v698_v10, %v1161_v8 }
 0x78e   :  { %v1170_v9 = vpop.permute.xlu0 %1169 }
 0x78f   :  { %v1172_v17 = vunpack.i.h.bf16 %v1170_v9  ;;  %v1171_v18 = vunpack.i.l.bf16 %v1170_v9 }
 0x79b   :  { %v1165_v12 = vpop.permute.xlu1 %1164 }
 0x79c   :  { %v1167_v13 = vunpack.i.h.bf16 %v1165_v12  ;;  %v1166_v14 = vunpack.i.l.bf16 %v1165_v12 }
 0x79e   :  { %v759_v19 = vsel %vm183_vm1, %v757_v16, %v1166_v14  ;;  %v760_v20 = vsel %vm183_vm1, %v758_v15, %v1167_v13 }
 0x79f   :  { %v762_v21 = vsel %vm761_vm6, %v759_v19, %v1171_v18  ;;  %v763_v22 = vsel %vm761_vm6, %v760_v20, %v1172_v17 }
 0x7a0   :  { %v1137_v23 = vpack.c.bf16 %v763_v22, %v762_v21 }
 0x7a2   :  { %1138 = vmatpush3.bf16.msra.mxu1 %v1137_v23 }
 0x7a3   :  { %1139 = vmatprep.subr.bf16.mxu1 %v1278_v63 }
 0x7a5   :  { %1079 = vmatmul.mubr.msk.f32.vlgmr.msra.gmra.mrb[4].mxu1 %vm667_vm4, %v42_v24 }
 0x7a6   :  { %1089 = vmatprep.mubr.msk.f32.mxu1 %vm1279_vm5, %v1280_v6  ;;  %1141 = vmatpush3.bf16.msra.mxu1 %v1140_v30 }
 0x7a7   :  { %1142 = vmatprep.subr.bf16.mxu1 %v1278_v63 }
 0x7aa   :  { %1144 = vmatpush3.bf16.msra.mxu1 %v1143_v32 }
 0x878   :  { %v833_v25 = vpop.f32.mrb[4].mxu1 }
 0x879   :  { %1193 = vrcp.f32 %v833_v25  ;;  %v1080_v26 = vpop.f32.mrb[5].mxu1 }
 0x883   :  { %v1194_v33 = vpop.eup %1193 }
 0x884   :  { %839 = vrot.lane.b32.xlu1 %v1194_v33, %s1276_s8 }
 0x888   :  { %854 = vrot.lane.b32.xlu1 %v847_v34, %s1273_s6 }
 0x88c   :  { %934 = vrot.lane.b32.xlu1 %v847_v34, %s1275_s1 }
 0x8f6   :  { %v840_v35 = vpop.permute.xlu1 %839 }
 0x8f7   :  { %v842_v36 = vmul.f32 %v840_v35, %v833_v25 }
 0x8f9   :  { %849 = vrot.lane.b32.xlu0 %v842_v36, %s1276_s8 }
 0x8fa   :  { %v855_v38 = vpop.permute.xlu1 %854 }
 0x8fd   :  { %930 = vrot.lane.b32.xlu0 %v847_v34, %s1274_s7 }
 0x8fe   :  { %v935_v45 = vpop.permute.xlu1 %934 }
 0x96b   :  { %v850_v37 = vpop.permute.xlu0 %849 }
 0x96c   :  { %v852_v3 = vsel %vm667_vm4, %v842_v36, %v850_v37 }
 0x96d   :  { %1090 = vmatmul.mubr.msk.f32.vlgmr.msra.gmra.mrb[6].mxu1 %vm183_vm1, %v852_v3 }
 0x96f   :  { %v931_v42 = vpop.permute.xlu0 %930 }
 0xa40   :  { %v926_v39 = vpop.f32.mrb[6].mxu1 }
 0xa41   :  { %v927_v43 = vadd.f32 %v926_v39, %v855_v38  ;;  %v1091_v44 = vpop.f32.mrb[7].mxu1 }
 0xa43   :  { %v933_v46 = vmul.f32 %v931_v42, %v927_v43 }
 0xa45   :  { %v937_v47 = vadd.f32 %v935_v45, %v933_v46 }
 0xa47   :  { %v938_v48 = vmul.f32 0.5, %v937_v47 }
 0xa49   :  { %1195 = vtanh.f32 %v938_v48 }
 0xa53   :  { %v1196_v4 = vpop.eup %1195 }
 0xa54   :  { %v940_v49 = vmul.f32 0.5, %v1196_v4 }
 0xa56   :  { %v941_v50 = vadd.f32 0.5, %v940_v49 }
 0xa58   :  { %943 = vst.msk [vmem:[#allocation7] sm:$0x3] %vm942_vm7, %v941_v50 }
 0xa59   :  { %1252 = shalt.err (!%p1249_p6)
}
 0xa5a   :  { %s1253_s15 = scalar_lea.hbm %s1458_s2, 32 }
 0xa5b   :  { %p1254_p7 = scmp.ne.s32.totalorder %s1458_s2, %s1253_s15  ;;  %p1257_p8 = scmp.lt.u32.totalorder %s1253_s15, %s1458_s2 }
 0xa5d   :  { %p1259_p9 = pnand %p1257_p8, %p1254_p7 }
 0xa5f   :  { %1262 = shalt.err (!%p1259_p9)
}
 0xa60   :  { %953 = dma.vmem_to_hbm [thread:$0]  %s951_s11, 32, %s1458_s2, [#allocation4]  }
 0xa61   :  { %1267 = dma.done.wait [#allocation4], 32  }
 0xa62   :  { %1268 = vsyncadd [#allocation4], 4294967264 }
 0xa63   :  { %957 = vsyncpa [#allocation3], 1 }
 0xa64   :  { %958 = vsyncpa [#allocation6], 1 }
 0xa65   :  { %959 = vsyncpa [#allocation4], 1 }

</bundles_post_ra>
